<compile_context>
chip_gen: v7x
topology: tpu7x:2x2x1
jax: 0.10.0
libtpu: 0.0.40
codegen_flags: <defaults>
</compile_context>

<pallas_src>
from functools import partial

import numpy as np
import jax
import jax.numpy as jnp
from jax import lax
from jax.experimental import pallas as pl
from jax.experimental.pallas import tpu as pltpu


def _round_up(n, m):
    return -(-n // m) * m


def _round_down(n, m):
    return (n // m) * m


def _region_kernel(sel_ref, x_ref, o_ref, *, stride, w_out, compute_dtype):
    """sel_ref: (s*W, s*s*W1) 0/1 selection matrix (resident across the grid).
    x_ref:   (r_blk, s*W) contiguous input rows (row index = c*H1 + h1).
    o_ref:   (s*s, r_blk, W1): the s*s (h2, w2) phases of those rows."""
    s = stride
    x = x_ref[...]
    if x.dtype != compute_dtype:
        # TODO(synk): integer feature maps ride the f32 MXU path (exact only
        # for |x| < 2**24); a pure data-movement path would be needed for
        # full int32 fidelity.
        x = x.astype(compute_dtype)
    # One fused MXU matmul does both the h2 and w2 de-interleave.
    y = jnp.dot(x, sel_ref[...],
                precision=lax.Precision.HIGHEST,
                preferred_element_type=jnp.float32)          # (r_blk, s*s*W1)
    for p in range(s * s):                                    # static unroll
        o_ref[p, :, :] = y[:, p * w_out:(p + 1) * w_out].astype(o_ref.dtype)


def _selection_matrix(stride, W, w_out, dtype):
    """sel[q, (h2*s + w2)*W1 + w1] = 1  iff  q == h2*W + w1*s + w2."""
    s = stride
    col = np.arange(s * s * w_out)
    h2 = col // (s * w_out)
    w2 = (col % (s * w_out)) // w_out
    w1 = col % w_out
    src = h2 * W + w1 * s + w2            # input lane feeding each output lane
    q = np.arange(s * W)
    return jnp.asarray((q[:, None] == src[None, :]).astype(dtype))


def _vmem_budget():
    """(double-buffered working-set budget, scoped vmem limit) per generation."""
    try:
        cap = int(pltpu.get_tpu_info().vmem_capacity_bytes)
    except Exception:
        cap = 64 * 1024 * 1024            # conservative (v7x per-TC) fallback
    ws_budget = (13 * cap) // 20          # ~65% of VMEM for 2x(in + out) blocks
    vmem_limit = max(32 * 1024 * 1024, (17 * cap) // 20)   # ~85%, with headroom
    return ws_budget, vmem_limit


def _pick_row_block(rows, per_row_bytes, sublane, budget_bytes, min_row_steps):
    """Rows per block: as big as the VMEM budget allows (whole slab when it
    fits), sublane-aligned, and split into >=min_row_steps tiles if requested."""
    if rows <= sublane:
        return rows                                   # one full-dim block
    r = max(sublane, budget_bytes // (2 * per_row_bytes))   # 2x double-buffer
    r = min(r, rows)
    if min_row_steps > 1:
        r = min(r, _round_up(pl.cdiv(rows, min_row_steps), sublane))
    r = max(sublane, _round_down(r, sublane))
    return min(r, rows)


def region_layer(x, stride: int = 2):
    """Pallas implementation of RegionLayer.forward (NCHW in, NCHW out)."""
    assert x.ndim == 4
    B, C, H, W = x.shape
    s = int(stride)
    assert H % s == 0, f"Stride {s} not a proper divisor of height {H}"
    assert W % s == 0, f"Stride {s} not a proper divisor of width {W}"
    if s == 1:
        return x
    H1, W1 = H // s, W // s
    rows = C * H1

    # Free (row-major) reshape: row = c*H1 + h1; its s*W trailing elements are
    # the s contiguous source H-rows of that (c, h1).
    x_rows = x.reshape(B, rows, s * W)

    if x.dtype == jnp.dtype(jnp.float32) or x.dtype == jnp.dtype(jnp.bfloat16):
        compute_dtype = x.dtype
    else:
        compute_dtype = jnp.float32       # see TODO(synk) in the kernel
    sel = _selection_matrix(s, W, W1, compute_dtype)

    itemsize = jnp.dtype(x.dtype).itemsize
    sublane = 32 // itemsize              # 8 / 16 / 32 rows per vreg tile
    per_row_bytes = (_round_up(s * W, 128)
                     + s * s * _round_up(W1, 128)) * itemsize
    ws_budget, vmem_limit = _vmem_budget()
    min_row_steps = 2 if B == 1 else 1    # keep both v7x TensorCores busy at B=1
    r_blk = _pick_row_block(rows, per_row_bytes, sublane, ws_budget, min_row_steps)
    grid = (B, pl.cdiv(rows, r_blk))

    kernel = partial(_region_kernel, stride=s, w_out=W1,
                     compute_dtype=compute_dtype)

    out = pl.pallas_call(
        kernel,
        out_shape=jax.ShapeDtypeStruct((B, s * s, rows, W1), x.dtype),
        grid_spec=pl.GridSpec(
            grid=grid,
            in_specs=[
                # Tiny selection matrix: constant index_map -> loaded once.
                pl.BlockSpec((s * W, s * s * W1), lambda b, r: (0, 0)),
                # One contiguous (r_blk, s*W) slab per step.
                pl.BlockSpec((None, r_blk, s * W), lambda b, r: (b, r, 0)),
            ],
            out_specs=pl.BlockSpec((None, s * s, r_blk, W1),
                                   lambda b, r: (b, 0, r, 0)),
        ),
        compiler_params=pltpu.CompilerParams(
            dimension_semantics=("parallel", "parallel"),
            vmem_limit_bytes=int(vmem_limit),
        ),
    )(sel, x_rows)

    # (B, s*s, C*H1, W1) -> (B, s*s*C, H1, W1): free reshape giving the
    # PyTorch channel order (h2*s + w2)*C + c.
    return out.reshape(B, C * s * s, H1, W1)


def region_layer_reference(x, stride: int = 2):
    """Pure-JAX reference reproducing the PyTorch view/transpose chain."""
    B, C, H, W = x.shape
    H1, W1 = H // stride, W // stride
    y = x.reshape(B, C, H1, stride, W1, stride)       # (b, c, h1, h2, w1, w2)
    y = jnp.transpose(y, (0, 3, 5, 1, 2, 4))          # (b, h2, w2, c, h1, w1)
    return y.reshape(B, C * stride * stride, H1, W1)


if __name__ == "__main__":
    key = jax.random.PRNGKey(0)
    # bf16-representable f32 values: the 0/1 selection matmul is a bit-exact
    # passthrough regardless of how many bf16 passes the f32 MXU mode uses.
    x = jax.random.normal(key, (2, 4, 16, 16), dtype=jnp.float32)
    x = x.astype(jnp.bfloat16).astype(jnp.float32)

    out = jax.block_until_ready(region_layer(x, stride=2))
    ref = region_layer_reference(x, stride=2)

    assert out.shape == (2, 16, 8, 8), out.shape
    assert out.dtype == x.dtype
    assert jnp.array_equal(out, ref), "Pallas kernel does not match reference"

    print("KERNEL_OK")
</pallas_src>

<mosaic_0001>
module attributes {stable_mosaic.version = 11 : i64} {
  func.func @_region_kernel(%arg0: i32, %arg1: i32, %arg2: memref<32x32xf32, #tpu.memory_space<vmem>>, %arg3: memref<1x32x32xf32, #tpu.memory_space<vmem>>, %arg4: memref<1x4x32x8xf32, #tpu.memory_space<vmem>>) attributes {dimension_semantics = [#tpu.dimension_semantics<parallel>, #tpu.dimension_semantics<parallel>], iteration_bounds = array<i64: 2, 1>, scalar_prefetch = 0 : i64, scratch_operands = 0 : i64, tpu.core_type = #tpu.core_type<tc>, window_params = [{pipeline_mode = #tpu.pipeline_mode<synchronous>, transform_indices = @transform_0, window_bounds = array<i64: 32, 32>}, {transform_indices = @transform_1, window_bounds = array<i64: 1, 32, 32>}, {transform_indices = @transform_2, window_bounds = array<i64: 1, 4, 32, 8>}]} {
    %c0 = arith.constant 0 : index
    %c0_0 = arith.constant 0 : index
    %c0_1 = arith.constant 0 : index
    %0 = vector.load %arg3[%c0, %c0_0, %c0_1] : memref<1x32x32xf32, #tpu.memory_space<vmem>>, vector<1x32x32xf32>
    %1 = vector.shape_cast %0 : vector<1x32x32xf32> to vector<32x32xf32>
    %c0_2 = arith.constant 0 : index
    %c0_3 = arith.constant 0 : index
    %2 = vector.load %arg2[%c0_2, %c0_3] : memref<32x32xf32, #tpu.memory_space<vmem>>, vector<32x32xf32>
    %cst = arith.constant dense<0.000000e+00> : vector<32x32xf32>
    %3 = tpu.matmul %1, %2, %cst {dimension_numbers = #tpu.dot_dimension_numbers<[1], [0], [0], [1], [0, 0, 1, 1], [], []>, precision = #tpu.contract_precision<fp32>} : vector<32x32xf32>, vector<32x32xf32>, vector<32x32xf32> -> vector<32x32xf32>
    %4 = vector.extract_strided_slice %3 {offsets = [0, 0], sizes = [32, 8], strides = [1, 1]} : vector<32x32xf32> to vector<32x8xf32>
    %c0_4 = arith.constant 0 : index
    %c0_5 = arith.constant 0 : index
    %c0_6 = arith.constant 0 : index
    %c0_7 = arith.constant 0 : index
    %5 = vector.load %arg4[%c0_4, %c0_5, %c0_6, %c0_7] : memref<1x4x32x8xf32, #tpu.memory_space<vmem>>, vector<1x1x32x8xf32>
    %6 = vector.shape_cast %5 : vector<1x1x32x8xf32> to vector<32x8xf32>
    %7 = vector.shape_cast %4 : vector<32x8xf32> to vector<1x1x32x8xf32>
    tpu.vector_store %arg4[%c0_4, %c0_5, %c0_6, %c0_7], %7 {strides = array<i32>} : memref<1x4x32x8xf32, #tpu.memory_space<vmem>>, vector<1x1x32x8xf32>,
    %8 = vector.extract_strided_slice %3 {offsets = [0, 8], sizes = [32, 8], strides = [1, 1]} : vector<32x32xf32> to vector<32x8xf32>
    %c0_8 = arith.constant 0 : index
    %c1 = arith.constant 1 : index
    %c0_9 = arith.constant 0 : index
    %c0_10 = arith.constant 0 : index
    %9 = vector.load %arg4[%c0_8, %c1, %c0_9, %c0_10] : memref<1x4x32x8xf32, #tpu.memory_space<vmem>>, vector<1x1x32x8xf32>
    %10 = vector.shape_cast %9 : vector<1x1x32x8xf32> to vector<32x8xf32>
    %11 = vector.shape_cast %8 : vector<32x8xf32> to vector<1x1x32x8xf32>
    tpu.vector_store %arg4[%c0_8, %c1, %c0_9, %c0_10], %11 {strides = array<i32>} : memref<1x4x32x8xf32, #tpu.memory_space<vmem>>, vector<1x1x32x8xf32>,
    %12 = vector.extract_strided_slice %3 {offsets = [0, 16], sizes = [32, 8], strides = [1, 1]} : vector<32x32xf32> to vector<32x8xf32>
    %c0_11 = arith.constant 0 : index
    %c2 = arith.constant 2 : index
    %c0_12 = arith.constant 0 : index
    %c0_13 = arith.constant 0 : index
    %13 = vector.load %arg4[%c0_11, %c2, %c0_12, %c0_13] : memref<1x4x32x8xf32, #tpu.memory_space<vmem>>, vector<1x1x32x8xf32>
    %14 = vector.shape_cast %13 : vector<1x1x32x8xf32> to vector<32x8xf32>
    %15 = vector.shape_cast %12 : vector<32x8xf32> to vector<1x1x32x8xf32>
    tpu.vector_store %arg4[%c0_11, %c2, %c0_12, %c0_13], %15 {strides = array<i32>} : memref<1x4x32x8xf32, #tpu.memory_space<vmem>>, vector<1x1x32x8xf32>,
    %16 = vector.extract_strided_slice %3 {offsets = [0, 24], sizes = [32, 8], strides = [1, 1]} : vector<32x32xf32> to vector<32x8xf32>
    %c0_14 = arith.constant 0 : index
    %c3 = arith.constant 3 : index
    %c0_15 = arith.constant 0 : index
    %c0_16 = arith.constant 0 : index
    %17 = vector.load %arg4[%c0_14, %c3, %c0_15, %c0_16] : memref<1x4x32x8xf32, #tpu.memory_space<vmem>>, vector<1x1x32x8xf32>
    %18 = vector.shape_cast %17 : vector<1x1x32x8xf32> to vector<32x8xf32>
    %19 = vector.shape_cast %16 : vector<32x8xf32> to vector<1x1x32x8xf32>
    tpu.vector_store %arg4[%c0_14, %c3, %c0_15, %c0_16], %19 {strides = array<i32>} : memref<1x4x32x8xf32, #tpu.memory_space<vmem>>, vector<1x1x32x8xf32>,
    return
  }
  func.func @transform_0(%arg0: i32, %arg1: i32) -> (i32, i32) {
    %c0_i32 = arith.constant 0 : i32
    %c0_i32_0 = arith.constant 0 : i32
    %c0_i32_1 = arith.constant 0 : i32
    return %c0_i32, %c0_i32_0 : i32, i32
  }
  func.func @transform_1(%arg0: i32, %arg1: i32) -> (i32, i32, i32) {
    %c0_i32 = arith.constant 0 : i32
    %c0_i32_0 = arith.constant 0 : i32
    return %arg0, %arg1, %c0_i32 : i32, i32, i32
  }
  func.func @transform_2(%arg0: i32, %arg1: i32) -> (i32, i32, i32, i32) {
    %c0_i32 = arith.constant 0 : i32
    %c0_i32_0 = arith.constant 0 : i32
    %c0_i32_1 = arith.constant 0 : i32
    return %arg0, %c0_i32, %arg1, %c0_i32_0 : i32, i32, i32, i32
  }
}

</mosaic_0001>

<bundles_post_ra>
// kernel: tpu_custom_call.1
= control target key start
LH: loop header
LB: loop body
LE: loop exit
PB: predicated region body
PF: predicated region fallthrough
CT: control target
= control target key end

     0   :  { %7 = vsyncpa [#allocation3], 0  ;;  %s1707_s0 = inlined_call_operand.hbm [shape: f32[32,32], index: 0, kind: input, shape index: {}]   ;;  %s1708_s1 = inlined_call_operand.hbm [shape: f32[2,32,32], index: 1, kind: input, shape index: {}]   ;;  %s1709_s2 = inlined_call_operand.vmem [shape: f32[2,4,32,8], index: 2, kind: output, shape index: {}]  }
   0x1   :  { %8 = vsyncpa [#allocation5], 0 }
   0x2   :  { %10 = vsyncpa [#allocation5 + $0x1], 0  ;;  %s1445_s9 = smov 0   ;;  %s1447_s10 = smov 0  }
   0x3   :  { %s1449_s11 = smov 0   ;;  %s1451_s12 = smov 0  }
   0x4   :  { %s1453_s13 = smov 0   ;;  %s1455_s14 = smov 0  }
   0x5 LB: > { %s1009_s15 = sadd.s32 4294967295, %s1421_s14   ;;  %p71_p0 = scmp.ne.s32.totalorder %s1405_s10, %s1401_s9  ;;  %s1421_s14 = sphi %s1455_s14, %s16_s14   ;;  %s1417_s13 = sphi %s1453_s13, %s1726_s13   ;;  %s1413_s12 = sphi %s1451_s12, %s1725_s12   ;;  %s1409_s11 = sphi %s1449_s11, %s1724_s11   ;;  %s1405_s10 = sphi %s1447_s10, %s1723_s10   ;;  %s1401_s9 = sphi %s1445_s9, %s1722_s9  }
   0x6   : > { %p1475_p1 = scmp.eq.s32.totalorder %s1009_s15, 0  ;;  %p1011_p2 = scmp.ge.s32.totalorder %s1421_s14, 1 }
   0x7   : > { %p110_p3 = scmp.lt.s32.totalorder %s1421_s14, 3  ;;  %s1423_s19 = smov [#allocation2]  }
   0x8   : > { %s1714_s16 = scalar_select %p1475_p1, 1, 0 }
   0x9   : > { %p1483_p4 = por %p1475_p1, %p71_p0  ;;  %p1487_p5 = pnand %p1011_p2, %p110_p3 }
   0xa   : > { %s122_s20 = sshll.u32 %s1423_s19, 4  ;;  %s28_s22 = sadd.s32 1, %s1417_s13  ;;  %s123_s20 = int_to_ptr.vmem [resolvable:$true] %s122_s20 }
   0xb   : > { %s1715_s17 = scalar_select %p1483_p4, 1, 0 }
   0xc   : > { %s1716_s18 = scalar_select %p1487_p5, 1, 0 }
   0xd   : > { %p1244_p6 = pneg %p1487_p5  ;;  %s1309_s25 = scalar_lea.hbm %s1707_s0, 512 }
   0xe   : > { %p1310_p8 = scmp.ne.s32.totalorder %s1707_s0, %s1309_s25  ;;  %p1316_p12 = scmp.lt.u32.totalorder %s1309_s25, %s1707_s0 }
   0xf   : > { %p1495_p7 = pnand %p1244_p6, %p1475_p1 }
  0x11   : > { %p1311_p9 = pneg %p1495_p7 }
  0x13   : > { %p1312_p10 = pnand %p1311_p9, %p1310_p8 }
  0x15   : > { %p1313_p11 = pneg %p1312_p10 }
  0x17   : > { %p1318_p13 = pnand %p1316_p12, %p1313_p11 }
  0x19   : > { %1321 = shalt.err (!%p1318_p13)
}
  0x1a   : > { %s1322_s30 = scalar_lea.vmem %s123_s20, 512  ;;  %p1330_p6 = scmp.lt.s32.totalorder %s123_s20, %s123_s20 }
  0x1b   : > { %p1323_p0 = scmp.ne.s32.totalorder %s123_s20, %s1322_s30  ;;  %p1331_p4 = scmp.lt.s32.totalorder %s1322_s30, %s1322_s30 }
  0x1d   : > { %p1325_p2 = pnand %p1323_p0, %p1311_p9  ;;  %p1332_p1 = por %p1331_p4, %p1330_p6 }
  0x1f   : > { %p1326_p3 = pneg %p1325_p2 }
  0x21   : > { %p1333_p5 = pnand %p1332_p1, %p1326_p3 }
  0x23   : > { %1336 = shalt.err (!%p1333_p5)
}
  0x24   : > { %s1424_s3 = smov 128   ;;  %s1425_s4 = smov 8  }
  0x25   : > { %1247 = dma.hbm_to_vmem [thread:$0]  (!%p1495_p7), %s1707_s0, 512, %s123_s20, [#allocation3], %s1424_s3, %s1424_s3, %s1425_s4  }
  0x26   : > { %p30_p1 = scmp.ge.s32.totalorder %s28_s22, 2  ;;  %s58_s7 = sadd.s32 1, %s1409_s11 }
  0x27   : > { %p65_p4 = scmp.ne.s32.totalorder %s1409_s11, %s1405_s10  ;;  %p66_p5 = scmp.eq.s32.totalorder %s1421_s14, 0 }
  0x28   : > { %s1728_s22 = smov (%p30_p1, %s28_s22), 0  ;;  %p1253_p9 = scmp.lt.s32.totalorder %s1421_s14, 2 }
  0x29   : > { %p67_p8 = por %p66_p5, %p65_p4  ;;  %s53_s8 = ssub.s32 %s1417_s13, %s1728_s22 }
  0x2a   : > { %s136_s9 = sand.u32 1, %s1409_s11   ;;  %p56_p10 = scmp.eq.s32.totalorder %s53_s8, 0 }
  0x2b   : > { %s1014_s15 = sshll.u32 %s136_s9, 5  ;;  %s1036_s19 = sshll.u32 %s1417_s13, 9 }
  0x2c   : > { %s1531_s21 = scalar_select %p56_p10, %s1409_s11, %s58_s7  }
  0x2d   : > { %s1536_s20 = scalar_lea.hbm %s1708_s1, %s1036_s19  ;;  %s140_s25 = scalar_lea.vmem [#allocation4], %s1014_s15 }
  0x2e   : > { %s149_s26 = sshll.u32 %s140_s25, 4  ;;  %p1538_p7 = pnand %p1253_p9, %p67_p8  ;;  %s1542_s26 = int_to_ptr.vmem [resolvable:$true] %s149_s26 }
  0x2f   : > { %s1544_s28 = scalar_lea.sflag [#allocation5], %s136_s9  ;;  %s1337_s29 = scalar_lea.hbm %s1536_s20, 512 }
  0x30   : > { %p1338_p11 = scmp.ne.s32.totalorder %s1536_s20, %s1337_s29  ;;  %p1339_p12 = pneg %p1538_p7 }
  0x31   : > { %s1342_s6 = scalar_lea.hbm %s1708_s1, 1024  ;;  %p1343_p2 = scmp.lt.u32.totalorder %s1536_s20, %s1708_s1 }
  0x32   : > { %p1340_p13 = pnand %p1339_p12, %p1338_p11  ;;  %p1344_p3 = scmp.lt.u32.totalorder %s1342_s6, %s1337_s29 }
  0x33   : > { %p1346_p1 = scmp.lt.u32.totalorder %s1337_s29, %s1536_s20 }
  0x34   : > { %p1341_p0 = pneg %p1340_p13  ;;  %p1345_p6 = por %p1344_p3, %p1343_p2 }
  0x36   : > { %p1347_p4 = por %p1346_p1, %p1345_p6 }
  0x38   : > { %p1348_p5 = pnand %p1347_p4, %p1341_p0 }
  0x3a   : > { %1351 = shalt.err (!%p1348_p5)
}
  0x3b   : > { %s1352_s9 = scalar_lea.vmem %s1542_s26, 512  ;;  %s1426_s15 = smov [#allocation4]  }
  0x3c   : > { %p1353_p8 = scmp.ne.s32.totalorder %s1542_s26, %s1352_s9  ;;  %s1357_s19 = sshll.u32 %s1426_s15, 4  ;;  %s1358_s19 = int_to_ptr.vmem [resolvable:$false] %s1357_s19 }
  0x3d   : > { %s1359_s23 = scalar_lea.vmem %s1358_s19, 1024  ;;  %p1360_p11 = scmp.lt.s32.totalorder %s1542_s26, %s1358_s19 }
  0x3e   : > { %p1355_p9 = pnand %p1353_p8, %p1339_p12  ;;  %p1361_p13 = scmp.lt.s32.totalorder %s1359_s23, %s1352_s9 }
  0x40   : > { %p1356_p10 = pneg %p1355_p9  ;;  %p1362_p2 = por %p1361_p13, %p1360_p11 }
  0x42   : > { %p1363_p3 = pnand %p1362_p2, %p1356_p10 }
  0x44   : > { %1366 = shalt.err (!%p1363_p3)
}
  0x45   : > { %1251 = dma.hbm_to_vmem [thread:$0]  (!%p1538_p7), %s1536_s20, 512, %s1542_s26, %s1544_s28, %s1424_s3, %s1424_s3, %s1425_s4  }
  0x46   : > { %p1719_p12 = scmp.ne.s32.totalorder %s1716_s18, 0 }
  0x47   : > { %p1720_p0 = scmp.ne.s32.totalorder (!%p1719_p12), %s1714_s16, 0 }
  0x48   : > { %161 = sbr.rel (%p1719_p12) target bundleno = 464 (0x1d0), region = 28 }
  0x4f   : > { %1392 = dma.done.wait (%p1720_p0), [#allocation3], 512  }
  0x50   : > { %1394 = vsyncadd (%p1720_p0), [#allocation3], 4294966784  ;;  %s167_s24 = sand.u32 1, %s1405_s10   ;;  %p1721_p6 = scmp.ne.s32.totalorder %s1715_s17, 0 }
  0x51   : > { %s1019_s25 = sshll.u32 %s167_s24, 5  ;;  %s168_s27 = scalar_lea.sflag [#allocation5], %s167_s24 }
  0x52   : > { %s171_s29 = scalar_lea.vmem [#allocation4], %s1019_s25 }
  0x53   : > { %1396 = dma.done.wait (%p1721_p6), %s168_s27, 512  }
  0x54   : > { %1398 = vsyncadd (%p1721_p6), %s168_s27, 4294966784  ;;  %vm215_vm0 = vcmask 261120   ;;  %v211_v0 = vld [vmem:[#allocation2] sm:$0xff]  ;;  %v212_v1 = vld [vmem:[#allocation2 + $0x8] sm:$0xff]  ;;  %p198_p7 = scmp.lt.s32.totalorder %s1413_s12, 1  ;;  %vm842_vm1 = vcmask 64512  }
  0x55   : > { %v213_v2 = vld [vmem:[#allocation2 + $0x10] sm:$0xff]  ;;  %v229_v3 = vand.u32 4294901760, %v211_v0  ;;  %v232_v4 = vand.u32 4294901760, %v212_v1  ;;  %v214_v5 = vld [vmem:[#allocation2 + $0x18] sm:$0xff]  ;;  %v207_v7 = vld [vmem:[%s171_s29] sm:$0xff]  ;;  %s1427_s4 = smov 112  }
  0x56   : > { %v235_v6 = vand.u32 4294901760, %v213_v2  ;;  %v208_v8 = vld [vmem:[%s171_s29 + $0x8] sm:$0xff]  ;;  %v238_v9 = vand.u32 4294901760, %v214_v5  ;;  %v217_v10 = vsel %vm215_vm0, %v207_v7, 0  ;;  %v209_v12 = vld [vmem:[%s171_s29 + $0x10] sm:$0xff]  ;;  %v210_v13 = vld [vmem:[%s171_s29 + $0x18] sm:$0xff] }
  0x57   : > { %v220_v11 = vsel %vm215_vm0, %v208_v8, 0  ;;  %v1588_v14 = vpack.c.bf16 %v232_v4, %v229_v3  ;;  %v1590_v15 = vand.u32 4294901760, %v217_v10  ;;  %v339_v17 = vsub.f32 %v211_v0, %v229_v3  ;;  %s1730_s12 = smov (!%p198_p7, %s1413_s12), 1  ;;  %s1429_s20 = smov 104  }
  0x58   : > { %v1592_v16 = vand.u32 4294901760, %v220_v11  ;;  %v1594_v18 = vpack.c.bf16 %v238_v9, %v235_v6  ;;  %v346_v19 = vsub.f32 %v212_v1, %v232_v4  ;;  %v223_v20 = vsel %vm215_vm0, %v209_v12, 0  ;;  %s1037_s16 = sshll.u32 %s1730_s12, 7  ;;  %s1428_s12 = smov 120  }
  0x59   : > { %v226_v21 = vsel %vm215_vm0, %v210_v13, 0  ;;  %1171 = vmatprep.subr.bf16.mxu1 %v1588_v14  ;;  %1195 = vmatprep.subr.bf16.mxu0 %v1588_v14  ;;  %v1601_v22 = vsub.f32 %v217_v10, %v1590_v15  ;;  %v340_v24 = vand.u32 4294901760, %v339_v17  ;;  %v1606_v25 = vand.u32 4294901760, %v223_v20  ;;  %s1655_s3 = scalar_lea.vmem %s1709_s2, %s1037_s16 }
  0x5a   : > { %v1604_v23 = vsub.f32 %v220_v11, %v1592_v16  ;;  %1173 = vmatpush3.bf16.msra.mxu1 %v1588_v14  ;;  %1197 = vmatpush3.bf16.msra.mxu0 %v1588_v14  ;;  %v347_v26 = vand.u32 4294901760, %v346_v19  ;;  %v1610_v27 = vand.u32 4294901760, %v226_v21  ;;  %v353_v28 = vsub.f32 %v213_v2, %v235_v6 }
  0x5b   : > { %v360_v29 = vsub.f32 %v214_v5, %v238_v9  ;;  %1175 = vmatprep.subr.bf16.mxu1 %v1594_v18  ;;  %1199 = vmatprep.subr.bf16.mxu0 %v1594_v18  ;;  %v299_v30 = vand.u32 4294901760, %v1601_v22  ;;  %v341_v32 = vsub.f32 %v339_v17, %v340_v24  ;;  %v1617_v33 = vsub.f32 %v223_v20, %v1606_v25 }
  0x5c   : > { %v309_v31 = vand.u32 4294901760, %v1604_v23  ;;  %v348_v34 = vsub.f32 %v346_v19, %v347_v26  ;;  %v1202_v35 = vpack.c.bf16 %v347_v26, %v340_v24  ;;  %v1620_v36 = vsub.f32 %v226_v21, %v1610_v27 }
  0x5d   : > { %v354_v37 = vand.u32 4294901760, %v353_v28  ;;  %v300_v38 = vsub.f32 %v1601_v22, %v299_v30  ;;  %1136 = vmatprep.mubr.f32.mxu0 %v299_v30  ;;  %v342_v40 = vand.u32 4294901760, %v341_v32  ;;  %v319_v41 = vand.u32 4294901760, %v1617_v33 }
  0x5e   : > { %v310_v39 = vsub.f32 %v1604_v23, %v309_v31  ;;  %1177 = vmatpush3.bf16.msra.mxu1 %v1594_v18  ;;  %1201 = vmatpush3.bf16.msra.mxu0 %v1594_v18  ;;  %v349_v42 = vand.u32 4294901760, %v348_v34  ;;  %v329_v43 = vand.u32 4294901760, %v1620_v36  ;;  %v361_v45 = vand.u32 4294901760, %v360_v29 }
  0x5f   : > { %v355_v44 = vsub.f32 %v353_v28, %v354_v37  ;;  %v301_v46 = vand.u32 4294901760, %v300_v38  ;;  %1203 = vmatprep.subr.bf16.mxu0 %v1202_v35  ;;  %v320_v48 = vsub.f32 %v1617_v33, %v319_v41  ;;  %v1186_v58 = vpack.c.bf16 %v346_v19, %v339_v17 }
  0x60   : > { %v311_v47 = vand.u32 4294901760, %v310_v39  ;;  %v1178_v49 = vpack.c.bf16 %v349_v42, %v342_v40  ;;  %v330_v50 = vsub.f32 %v1620_v36, %v329_v43  ;;  %v362_v52 = vsub.f32 %v360_v29, %v361_v45 }
  0x61   : > { %v356_v51 = vand.u32 4294901760, %v355_v44  ;;  %1094 = vmatprep.mubr.f32.mxu1 %v301_v46  ;;  %1137 = vmatmul.mubr.f32.vlgmr.msra.gmra.mrb[0].mxu0 %v309_v31  ;;  %v321_v53 = vand.u32 4294901760, %v320_v48  ;;  %v1206_v54 = vpack.c.bf16 %v361_v45, %v354_v37  ;;  %v1190_v59 = vpack.c.bf16 %v360_v29, %v353_v28 }
  0x62   : > { %1095 = vmatmul.mubr.f32.vlgmr.msra.gmra.mrb[0].mxu1 %v311_v47  ;;  %1179 = vmatprep.subr.bf16.mxu1 %v1178_v49  ;;  %v331_v55 = vand.u32 4294901760, %v330_v50  ;;  %v363_v56 = vand.u32 4294901760, %v362_v52 }
  0x63   : > { %1181 = vmatpush3.bf16.msra.mxu1 %v1178_v49  ;;  %1205 = vmatpush3.bf16.msra.mxu0 %v1202_v35 }
  0x64   : > { %1097 = vmatprep.mubr.f32.mxu1 %v321_v53  ;;  %1139 = vmatprep.mubr.f32.mxu0 %v319_v41  ;;  %v1182_v57 = vpack.c.bf16 %v363_v56, %v356_v51 }
  0x65   : > { %1140 = vmatmul.mubr.f32.gmra.mrb[2].mxu0 %v329_v43  ;;  %1207 = vmatprep.subr.bf16.mxu0 %v1206_v54 }
  0x66   : > { %1098 = vmatmul.mubr.f32.gmra.mrb[2].mxu1 %v331_v55  ;;  %1183 = vmatprep.subr.bf16.mxu1 %v1182_v57 }
  0x67   : > { %1185 = vmatpush3.bf16.msra.mxu1 %v1182_v57  ;;  %1209 = vmatpush3.bf16.msra.mxu0 %v1206_v54 }
  0x68   : > { %1108 = vmatprep.mubr.f32.mxu1 %v1590_v15  ;;  %1150 = vmatprep.mubr.f32.mxu0 %v1590_v15 }
  0x69   : > { %1187 = vmatprep.subr.bf16.mxu1 %v1186_v58  ;;  %1211 = vmatprep.subr.bf16.mxu0 %v1588_v14 }
  0x6a   : > { %1109 = vmatmul.mubr.f32.vlgmr.msra.gmra.mrb[0].mxu1 %v1592_v16  ;;  %1151 = vmatmul.mubr.f32.vlgmr.msra.gmra.mrb[0].mxu0 %v1592_v16 }
  0x6b   : > { %1189 = vmatpush3.bf16.msra.mxu1 %v1186_v58  ;;  %1213 = vmatpush3.bf16.msra.mxu0 %v1588_v14 }
  0x6c   : > { %1111 = vmatprep.mubr.f32.mxu1 %v1606_v25  ;;  %1153 = vmatprep.mubr.f32.mxu0 %v1606_v25 }
  0x6d   : > { %1191 = vmatprep.subr.bf16.mxu1 %v1190_v59  ;;  %1215 = vmatprep.subr.bf16.mxu0 %v1594_v18 }
  0x6e   : > { %1112 = vmatmul.mubr.f32.gmra.mrb[2].mxu1 %v1610_v27  ;;  %1154 = vmatmul.mubr.f32.gmra.mrb[2].mxu0 %v1610_v27 }
  0x6f   : > { %1193 = vmatpush3.bf16.msra.mxu1 %v1190_v59  ;;  %1217 = vmatpush3.bf16.msra.mxu0 %v1594_v18 }
  0x70   : > { %1122 = vmatprep.mubr.f32.mxu1 %v1601_v22  ;;  %1164 = vmatprep.mubr.f32.mxu0 %v1590_v15 }
  0x72   : > { %1123 = vmatmul.mubr.f32.vlgmr.msra.gmra.mrb[0].mxu1 %v1604_v23  ;;  %1165 = vmatmul.mubr.f32.vlgmr.msra.gmra.mrb[0].mxu0 %v1592_v16 }
  0x73   : > { %1125 = vmatprep.mubr.f32.mxu1 %v1617_v33  ;;  %1167 = vmatprep.mubr.f32.mxu0 %v1606_v25 }
  0x76   : > { %1126 = vmatmul.mubr.f32.gmra.mrb[2].mxu1 %v1620_v36  ;;  %1168 = vmatmul.mubr.f32.gmra.mrb[2].mxu0 %v1610_v27 }
 0x145   : > { %v1124_v60 = vpop.f32.mrb[0].mxu1  ;;  %v1166_v61 = vpop.f32.mrb[0].mxu0 }
 0x146   : > { %v1218_v62 = vadd.f32 %v1166_v61, %v1124_v60  ;;  %v522_v63 = vpop.f32.mrb[1].mxu1  ;;  %v820_v0 = vpop.f32.mrb[1].mxu0 }
 0x147   : > { %v1219_v1 = vadd.f32 %v820_v0, %v522_v63 }
 0x148   : > { %844 = vst.msk [vmem:[%s1655_s3 + $0x8] sm:$0xff] %vm842_vm1, %v1218_v62  ;;  %870 = vrot.lane.b32.xlu1 %v1218_v62, %s1427_s4  ;;  %853 = vrot.lane.b32.xlu0 %v1218_v62, %s1428_s12 }
 0x149   : > { %843 = vst.msk [vmem:[%s1655_s3] sm:$0xff] %vm842_vm1, %v1219_v1  ;;  %v1127_v2 = vpop.f32.mrb[2].mxu1  ;;  %v1169_v3 = vpop.f32.mrb[2].mxu0 }
 0x14a   : > { %v1220_v4 = vadd.f32 %v1169_v3, %v1127_v2  ;;  %v536_v5 = vpop.f32.mrb[3].mxu1  ;;  %v832_v6 = vpop.f32.mrb[3].mxu0 }
 0x14b   : > { %v1221_v7 = vadd.f32 %v832_v6, %v536_v5 }
 0x14c   : > { %846 = vst.msk [vmem:[%s1655_s3 + $0x18] sm:$0xff] %vm842_vm1, %v1220_v4  ;;  %887 = vrot.lane.b32.xlu1 %v1218_v62, %s1429_s20  ;;  %851 = vrot.lane.b32.xlu0 %v1219_v1, %s1428_s12 }
 0x14d   : > { %845 = vst.msk [vmem:[%s1655_s3 + $0x10] sm:$0xff] %vm842_vm1, %v1221_v7 }
 0x150   : > { %868 = vrot.lane.b32.xlu0 %v1219_v1, %s1427_s4  ;;  %857 = vrot.lane.b32.xlu1 %v1220_v4, %s1428_s12 }
 0x154   : > { %885 = vrot.lane.b32.xlu0 %v1219_v1, %s1429_s20  ;;  %874 = vrot.lane.b32.xlu1 %v1220_v4, %s1427_s4 }
 0x158   : > { %872 = vrot.lane.b32.xlu0 %v1221_v7, %s1427_s4  ;;  %855 = vrot.lane.b32.xlu1 %v1221_v7, %s1428_s12 }
 0x15c   : > { %889 = vrot.lane.b32.xlu0 %v1221_v7, %s1429_s20  ;;  %891 = vrot.lane.b32.xlu1 %v1220_v4, %s1429_s20 }
 0x1ba   : > { %v871_v8 = vpop.permute.xlu1 %870  ;;  %v854_v9 = vpop.permute.xlu0 %853 }
 0x1bb   : > { %1027 = vst.msk [vmem:[%s1655_s3 + $0x48] sm:$0xff] %vm842_vm1, %v871_v8  ;;  %1023 = vst.msk [vmem:[%s1655_s3 + $0x28] sm:$0xff] %vm842_vm1, %v854_v9 }
 0x1be   : > { %v888_v10 = vpop.permute.xlu1 %887  ;;  %v852_v11 = vpop.permute.xlu0 %851 }
 0x1bf   : > { %1031 = vst.msk [vmem:[%s1655_s3 + $0x68] sm:$0xff] %vm842_vm1, %v888_v10  ;;  %1022 = vst.msk [vmem:[%s1655_s3 + $0x20] sm:$0xff] %vm842_vm1, %v852_v11 }
 0x1c2   : > { %v869_v12 = vpop.permute.xlu0 %868  ;;  %v858_v13 = vpop.permute.xlu1 %857 }
 0x1c3   : > { %1026 = vst.msk [vmem:[%s1655_s3 + $0x40] sm:$0xff] %vm842_vm1, %v869_v12  ;;  %1025 = vst.msk [vmem:[%s1655_s3 + $0x38] sm:$0xff] %vm842_vm1, %v858_v13 }
 0x1c6   : > { %v886_v14 = vpop.permute.xlu0 %885  ;;  %v875_v15 = vpop.permute.xlu1 %874 }
 0x1c7   : > { %1030 = vst.msk [vmem:[%s1655_s3 + $0x60] sm:$0xff] %vm842_vm1, %v886_v14  ;;  %1029 = vst.msk [vmem:[%s1655_s3 + $0x58] sm:$0xff] %vm842_vm1, %v875_v15 }
 0x1ca   : > { %v873_v16 = vpop.permute.xlu0 %872  ;;  %v856_v17 = vpop.permute.xlu1 %855 }
 0x1cb   : > { %1028 = vst.msk [vmem:[%s1655_s3 + $0x50] sm:$0xff] %vm842_vm1, %v873_v16  ;;  %1024 = vst.msk [vmem:[%s1655_s3 + $0x30] sm:$0xff] %vm842_vm1, %v856_v17 }
 0x1ce   : > { %v890_v18 = vpop.permute.xlu0 %889  ;;  %v892_v19 = vpop.permute.xlu1 %891 }
 0x1cf   : > { %1032 = vst.msk [vmem:[%s1655_s3 + $0x70] sm:$0xff] %vm842_vm1, %v890_v18  ;;  %1033 = vst.msk [vmem:[%s1655_s3 + $0x78] sm:$0xff] %vm842_vm1, %v892_v19 }
 0x1d0 PF: > { %s16_s14 = sadd.s32 1, %s1421_s14   ;;  %s1722_s9 = smov %s1405_s10 }
 0x1d1   : > { %p13_p1 = scmp.ge.s32.totalorder %s16_s14, 4   ;;  %s1723_s10 = smov %s1409_s11 }
 0x1d2   : > { %s1724_s11 = smov %s1531_s21  ;;  %s1725_s12 = smov %s1417_s13 }
 0x1d3   : > { %s1726_s13 = smov %s1728_s22  ;;  %15 = sbr.rel (!%p13_p1) target bundleno = 5 (0x5), region = 76 }
 0x1da   :  { %932 = vsyncpa [#allocation3], 1 }
 0x1db   :  { %934 = vsyncpa [#allocation3 + $0x1], 1 }
 0x1dc   :  { %935 = vsyncpa [#allocation5], 1 }
 0x1dd   :  { %937 = vsyncpa [#allocation5 + $0x1], 1 }

</bundles_post_ra>
